<compile_context>
chip_gen: v7x
topology: tpu7x:2x2x1
jax: 0.10.0
libtpu: 0.0.40
codegen_flags: <defaults>
</compile_context>

<pallas_src>
import functools

import jax
import jax.numpy as jnp
from jax import lax
from jax.experimental import pallas as pl
from jax.experimental.pallas import tpu as pltpu

LANES = 128
SUB_ROWS = 64  # inner strip: (64, 128) f32 = 32 KiB per array, fits the vreg file


def _max_block_rows():
    """Largest block (in rows of 128 lanes) that keeps double-buffered inputs
    inside the default scoped-VMEM budget for the current TPU generation."""
    try:
        kind = jax.devices()[0].device_kind.lower()
    except Exception:
        return 4096
    if any(v in kind for v in ("v2", "v3", "v4", "v5")):
        # 2 MiB/input/step -> 8 MiB double-buffered < 16 MiB scoped default.
        return 4096
    # v6e / v7x: 4 MiB/input/step -> 16 MiB double-buffered < 32 MiB default.
    return 8192


def _make_kernel(sub_rows: int, n_sub: int):
    """Per-block partial sums, emitted as an (4, 8, 128) tile:
         [0] sum (x - t)^2   [1] sum sx*st   [2] sum sx   [3] sum st
    """
    groups = sub_rows // 8

    def kernel(x_ref, t_ref, o_ref):
        def fold(v):
            # (sub_rows, 128) -> (groups, 8, 128) is a layout no-op; the
            # leading-axis sum is plain vreg-wise VPU adds, so the loop carry
            # stays at one vreg per quantity (no VMEM read-modify-write).
            return jnp.sum(v.reshape(groups, 8, LANES), axis=0)

        def body(j, carry):
            a_d2, a_tp, a_sx, a_st = carry
            r0 = pl.multiple_of(j * sub_rows, sub_rows)
            xs = x_ref[pl.ds(r0, sub_rows), :].astype(jnp.float32)
            ts = t_ref[pl.ds(r0, sub_rows), :].astype(jnp.float32)
            d = xs - ts
            # sigmoid(x) == 0.5 * tanh(0.5 * x) + 0.5: one EUP op per element
            # instead of exp + reciprocal.
            sx = 0.5 * jnp.tanh(0.5 * xs) + 0.5
            st = 0.5 * jnp.tanh(0.5 * ts) + 0.5
            return (a_d2 + fold(d * d),
                    a_tp + fold(sx * st),
                    a_sx + fold(sx),
                    a_st + fold(st))

        zero = jnp.zeros((8, LANES), jnp.float32)
        a_d2, a_tp, a_sx, a_st = lax.fori_loop(
            0, n_sub, body, (zero, zero, zero, zero),
            unroll=min(8, max(1, n_sub)))

        # Aligned, unmasked (8, 128) full-tile stores, once per (large) block.
        o_ref[0, 0, :, :] = a_d2
        o_ref[0, 1, :, :] = a_tp
        o_ref[0, 2, :, :] = a_sx
        o_ref[0, 3, :, :] = a_st

    return kernel


def _partial_sums(x2, t2, block_rows, sub_rows, num_blocks):
    n_sub = block_rows // sub_rows
    kernel = _make_kernel(sub_rows, n_sub)
    return pl.pallas_call(
        kernel,
        out_shape=jax.ShapeDtypeStruct((num_blocks, 4, 8, LANES), jnp.float32),
        grid_spec=pltpu.PrefetchScalarGridSpec(
            num_scalar_prefetch=0,
            grid=(num_blocks,),
            in_specs=[
                pl.BlockSpec((block_rows, LANES), lambda i: (i, 0)),
                pl.BlockSpec((block_rows, LANES), lambda i: (i, 0)),
            ],
            out_specs=pl.BlockSpec((1, 4, 8, LANES), lambda i: (i, 0, 0, 0)),
        ),
        compiler_params=pltpu.CompilerParams(
            dimension_semantics=("parallel",)),
    )(x2, t2)


@functools.partial(jax.jit, static_argnames=("alpha", "beta", "smooth"))
def tversky_plus_mse_loss(inputs, targets, alpha=1.0, beta=1.0, smooth=1 - 9):
    # NOTE: default smooth=1-9 (== -8) mirrors the PyTorch module verbatim
    # (almost certainly an upstream typo for 1e-9, but we keep the spec).
    x = jnp.ravel(inputs)   # no wrapper-side astype: cast on load in kernel
    t = jnp.ravel(targets)
    n_total = x.shape[0]

    rows_total = n_total // LANES
    max_rows = _max_block_rows()
    max_strips = max_rows // SUB_ROWS

    if rows_total >= SUB_ROWS:
        n_strips = rows_total // SUB_ROWS
        # Cap the block at the per-generation VMEM budget, but keep >= 2 grid
        # steps whenever possible (pipelining + both TensorCores on v7x).
        if n_strips >= 2:
            strips_per_block = max(1, min(max_strips, n_strips // 2))
        else:
            strips_per_block = 1
        block_rows = strips_per_block * SUB_ROWS
        sub_rows = SUB_ROWS
    else:
        block_rows = (rows_total // 8) * 8
        sub_rows = block_rows
    num_blocks = rows_total // block_rows if block_rows > 0 else 0
    rows_kernel = num_blocks * block_rows
    bulk_elems = rows_kernel * LANES

    sum_d2 = jnp.float32(0.0)
    sum_tp = jnp.float32(0.0)
    sum_sx = jnp.float32(0.0)
    sum_st = jnp.float32(0.0)

    if num_blocks > 0:
        if n_total % LANES == 0:
            # Free (copy-less) reshape; the kernel only touches the first
            # rows_kernel rows of the slab.
            x2 = x.reshape(rows_total, LANES)
            t2 = t.reshape(rows_total, LANES)
        else:
            # TODO(synk): for non-128-aligned flat lengths this bulk slice is an
            # extra HBM read+write of both inputs; a 1-D BlockSpec with an
            # in-kernel reshape would remove it.
            x2 = lax.slice(x, (0,), (bulk_elems,)).reshape(rows_kernel, LANES)
            t2 = lax.slice(t, (0,), (bulk_elems,)).reshape(rows_kernel, LANES)
        partials = _partial_sums(x2, t2, block_rows, sub_rows, num_blocks)
        sums = jnp.sum(partials, axis=(0, 2, 3))  # (4,)
        sum_d2 = sums[0]
        sum_tp = sums[1]
        sum_sx = sums[2]
        sum_st = sums[3]

    if bulk_elems < n_total:
        # Tail (< one kernel block): plain JAX, negligible work, fused by XLA.
        xt = x[bulk_elems:].astype(jnp.float32)
        tt = t[bulk_elems:].astype(jnp.float32)
        dt = xt - tt
        sxt = jax.nn.sigmoid(xt)
        stt = jax.nn.sigmoid(tt)
        sum_d2 = sum_d2 + jnp.sum(dt * dt)
        sum_tp = sum_tp + jnp.sum(sxt * stt)
        sum_sx = sum_sx + jnp.sum(sxt)
        sum_st = sum_st + jnp.sum(stt)

    mse = sum_d2 / jnp.float32(n_total)
    tp = sum_tp
    fp = sum_sx - sum_tp        # sum((1 - st) * sx)
    fn = sum_st - sum_tp        # sum(st * (1 - sx))
    tversky = (tp + smooth) / (tp + alpha * fp + beta * fn + smooth)
    return (1.0 - tversky) + mse


def _reference(inputs, targets, alpha=1.0, beta=1.0, smooth=1 - 9):
    x = jnp.ravel(inputs).astype(jnp.float32)
    t = jnp.ravel(targets).astype(jnp.float32)
    mse = jnp.mean((x - t) ** 2)
    sx = jax.nn.sigmoid(x)
    st = jax.nn.sigmoid(t)
    tp = jnp.sum(sx * st)
    fp = jnp.sum((1.0 - st) * sx)
    fn = jnp.sum(st * (1.0 - sx))
    tversky = (tp + smooth) / (tp + alpha * fp + beta * fn + smooth)
    return (1.0 - tversky) + mse


if __name__ == "__main__":
    key = jax.random.PRNGKey(0)
    k1, k2 = jax.random.split(key)
    # Small NCHW-shaped inputs consistent with a segmentation-style loss.
    x = jax.random.normal(k1, (2, 4, 16, 16), dtype=jnp.float32)
    y = jax.random.normal(k2, (2, 4, 16, 16), dtype=jnp.float32)

    loss = tversky_plus_mse_loss(x, y)
    jax.block_until_ready(loss)

    ref = _reference(x, y)
    assert jnp.allclose(loss, ref, rtol=1e-5, atol=1e-5), (loss, ref)
    print("KERNEL_OK")
</pallas_src>

<mosaic_0001>
module attributes {stable_mosaic.version = 11 : i64} {
  func.func @kernel(%arg0: i32, %arg1: memref<16x128xf32, #tpu.memory_space<vmem>>, %arg2: memref<16x128xf32, #tpu.memory_space<vmem>>, %arg3: memref<1x4x8x128xf32, #tpu.memory_space<vmem>>) attributes {dimension_semantics = [#tpu.dimension_semantics<parallel>], iteration_bounds = array<i64: 1>, scalar_prefetch = 0 : i64, scratch_operands = 0 : i64, tpu.core_type = #tpu.core_type<tc>, window_params = [{transform_indices = @transform_0, window_bounds = array<i64: 16, 128>}, {transform_indices = @transform_1, window_bounds = array<i64: 16, 128>}, {transform_indices = @transform_2, window_bounds = array<i64: 1, 4, 8, 128>}]} {
    %cst = arith.constant 0.000000e+00 : f32
    %0 = vector.broadcast %cst : f32 to vector<8x128xf32>
    %c0_i32 = arith.constant 0 : i32
    %c16_i32 = arith.constant 16 : i32
    %1 = arith.muli %c0_i32, %c16_i32 : i32
    %2 = tpu.assume_multiple %1, 16 : i32
    %3 = arith.index_cast %2 : i32 to index
    %c0 = arith.constant 0 : index
    %4 = vector.load %arg1[%3, %c0] : memref<16x128xf32, #tpu.memory_space<vmem>>, vector<16x128xf32>
    %5 = arith.index_cast %2 : i32 to index
    %c0_0 = arith.constant 0 : index
    %6 = vector.load %arg2[%5, %c0_0] : memref<16x128xf32, #tpu.memory_space<vmem>>, vector<16x128xf32>
    %7 = arith.subf %4, %6 : vector<16x128xf32>
    %cst_1 = arith.constant 5.000000e-01 : f32
    %8 = vector.broadcast %cst_1 : f32 to vector<16x128xf32>
    %9 = arith.mulf %8, %4 : vector<16x128xf32>
    %10 = math.tanh %9 : vector<16x128xf32>
    %cst_2 = arith.constant 5.000000e-01 : f32
    %11 = vector.broadcast %cst_2 : f32 to vector<16x128xf32>
    %12 = arith.mulf %11, %10 : vector<16x128xf32>
    %cst_3 = arith.constant 5.000000e-01 : f32
    %13 = vector.broadcast %cst_3 : f32 to vector<16x128xf32>
    %14 = arith.addf %12, %13 : vector<16x128xf32>
    %cst_4 = arith.constant 5.000000e-01 : f32
    %15 = vector.broadcast %cst_4 : f32 to vector<16x128xf32>
    %16 = arith.mulf %15, %6 : vector<16x128xf32>
    %17 = math.tanh %16 : vector<16x128xf32>
    %cst_5 = arith.constant 5.000000e-01 : f32
    %18 = vector.broadcast %cst_5 : f32 to vector<16x128xf32>
    %19 = arith.mulf %18, %17 : vector<16x128xf32>
    %cst_6 = arith.constant 5.000000e-01 : f32
    %20 = vector.broadcast %cst_6 : f32 to vector<16x128xf32>
    %21 = arith.addf %19, %20 : vector<16x128xf32>
    %22 = arith.mulf %7, %7 : vector<16x128xf32>
    %23 = vector.shape_cast %22 : vector<16x128xf32> to vector<2x8x128xf32>
    %cst_7 = arith.constant dense<0.000000e+00> : vector<8x128xf32>
    %24 = vector.multi_reduction <add>, %23, %cst_7 [0] : vector<2x8x128xf32> to vector<8x128xf32>
    %25 = arith.addf %0, %24 : vector<8x128xf32>
    %26 = arith.mulf %14, %21 : vector<16x128xf32>
    %27 = vector.shape_cast %26 : vector<16x128xf32> to vector<2x8x128xf32>
    %cst_8 = arith.constant dense<0.000000e+00> : vector<8x128xf32>
    %28 = vector.multi_reduction <add>, %27, %cst_8 [0] : vector<2x8x128xf32> to vector<8x128xf32>
    %29 = arith.addf %0, %28 : vector<8x128xf32>
    %30 = vector.shape_cast %14 : vector<16x128xf32> to vector<2x8x128xf32>
    %cst_9 = arith.constant dense<0.000000e+00> : vector<8x128xf32>
    %31 = vector.multi_reduction <add>, %30, %cst_9 [0] : vector<2x8x128xf32> to vector<8x128xf32>
    %32 = arith.addf %0, %31 : vector<8x128xf32>
    %33 = vector.shape_cast %21 : vector<16x128xf32> to vector<2x8x128xf32>
    %cst_10 = arith.constant dense<0.000000e+00> : vector<8x128xf32>
    %34 = vector.multi_reduction <add>, %33, %cst_10 [0] : vector<2x8x128xf32> to vector<8x128xf32>
    %35 = arith.addf %0, %34 : vector<8x128xf32>
    %c1_i32 = arith.constant 1 : i32
    %c0_11 = arith.constant 0 : index
    %c0_12 = arith.constant 0 : index
    %c0_13 = arith.constant 0 : index
    %c0_14 = arith.constant 0 : index
    %36 = vector.load %arg3[%c0_11, %c0_12, %c0_13, %c0_14] : memref<1x4x8x128xf32, #tpu.memory_space<vmem>>, vector<1x1x8x128xf32>
    %37 = vector.shape_cast %36 : vector<1x1x8x128xf32> to vector<8x128xf32>
    %38 = vector.shape_cast %25 : vector<8x128xf32> to vector<1x1x8x128xf32>
    tpu.vector_store %arg3[%c0_11, %c0_12, %c0_13, %c0_14], %38 {strides = array<i32>} : memref<1x4x8x128xf32, #tpu.memory_space<vmem>>, vector<1x1x8x128xf32>,
    %c0_15 = arith.constant 0 : index
    %c1 = arith.constant 1 : index
    %c0_16 = arith.constant 0 : index
    %c0_17 = arith.constant 0 : index
    %39 = vector.load %arg3[%c0_15, %c1, %c0_16, %c0_17] : memref<1x4x8x128xf32, #tpu.memory_space<vmem>>, vector<1x1x8x128xf32>
    %40 = vector.shape_cast %39 : vector<1x1x8x128xf32> to vector<8x128xf32>
    %41 = vector.shape_cast %29 : vector<8x128xf32> to vector<1x1x8x128xf32>
    tpu.vector_store %arg3[%c0_15, %c1, %c0_16, %c0_17], %41 {strides = array<i32>} : memref<1x4x8x128xf32, #tpu.memory_space<vmem>>, vector<1x1x8x128xf32>,
    %c0_18 = arith.constant 0 : index
    %c2 = arith.constant 2 : index
    %c0_19 = arith.constant 0 : index
    %c0_20 = arith.constant 0 : index
    %42 = vector.load %arg3[%c0_18, %c2, %c0_19, %c0_20] : memref<1x4x8x128xf32, #tpu.memory_space<vmem>>, vector<1x1x8x128xf32>
    %43 = vector.shape_cast %42 : vector<1x1x8x128xf32> to vector<8x128xf32>
    %44 = vector.shape_cast %32 : vector<8x128xf32> to vector<1x1x8x128xf32>
    tpu.vector_store %arg3[%c0_18, %c2, %c0_19, %c0_20], %44 {strides = array<i32>} : memref<1x4x8x128xf32, #tpu.memory_space<vmem>>, vector<1x1x8x128xf32>,
    %c0_21 = arith.constant 0 : index
    %c3 = arith.constant 3 : index
    %c0_22 = arith.constant 0 : index
    %c0_23 = arith.constant 0 : index
    %45 = vector.load %arg3[%c0_21, %c3, %c0_22, %c0_23] : memref<1x4x8x128xf32, #tpu.memory_space<vmem>>, vector<1x1x8x128xf32>
    %46 = vector.shape_cast %45 : vector<1x1x8x128xf32> to vector<8x128xf32>
    %47 = vector.shape_cast %35 : vector<8x128xf32> to vector<1x1x8x128xf32>
    tpu.vector_store %arg3[%c0_21, %c3, %c0_22, %c0_23], %47 {strides = array<i32>} : memref<1x4x8x128xf32, #tpu.memory_space<vmem>>, vector<1x1x8x128xf32>,
    return
  }
  func.func @transform_0(%arg0: i32) -> (i32, i32) {
    %c0_i32 = arith.constant 0 : i32
    %c0_i32_0 = arith.constant 0 : i32
    return %arg0, %c0_i32 : i32, i32
  }
  func.func @transform_1(%arg0: i32) -> (i32, i32) {
    %c0_i32 = arith.constant 0 : i32
    %c0_i32_0 = arith.constant 0 : i32
    return %arg0, %c0_i32 : i32, i32
  }
  func.func @transform_2(%arg0: i32) -> (i32, i32, i32, i32) {
    %c0_i32 = arith.constant 0 : i32
    %c0_i32_0 = arith.constant 0 : i32
    %c0_i32_1 = arith.constant 0 : i32
    %c0_i32_2 = arith.constant 0 : i32
    return %arg0, %c0_i32, %c0_i32_0, %c0_i32_1 : i32, i32, i32, i32
  }
}

</mosaic_0001>

<bundles_post_ra>
// kernel: tversky_plus_mse_loss.1
= control target key start
LH: loop header
LB: loop body
LE: loop exit
PB: predicated region body
PF: predicated region fallthrough
CT: control target
= control target key end

     0   :  { %s106_s0 = inlined_call_operand.vmem [shape: f32[16,128], index: 0, kind: input, shape index: {}]   ;;  %s107_s1 = inlined_call_operand.vmem [shape: f32[16,128], index: 1, kind: input, shape index: {}]   ;;  %s108_s2 = inlined_call_operand.vmem [shape: f32[1,4,8,128], index: 2, kind: output, shape index: {}]  }
   0x1   :  { %v11_v0 = vld [vmem:[%s106_s0] sm:$0xff]  ;;  %v12_v1 = vld [vmem:[%s106_s0 + $0x8] sm:$0xff] }
   0x2   :  { %v13_v2 = vld [vmem:[%s107_s1] sm:$0xff]  ;;  %v14_v3 = vld [vmem:[%s107_s1 + $0x8] sm:$0xff]  ;;  %v17_v5 = vmul.f32 0.5, %v11_v0  ;;  %v18_v6 = vmul.f32 0.5, %v12_v1 }
   0x3   :  { %v15_v4 = vsub.f32 %v11_v0, %v13_v2  ;;  %v25_v7 = vmul.f32 0.5, %v13_v2  ;;  %v16_v8 = vsub.f32 %v12_v1, %v14_v3  ;;  %v26_v9 = vmul.f32 0.5, %v14_v3 }
   0x4   :  { %59 = vtanh.f32 %v17_v5 }
   0x5   :  { %v33_v10 = vmul.f32 %v15_v4, %v15_v4  ;;  %61 = vtanh.f32 %v18_v6  ;;  %v34_v11 = vmul.f32 %v16_v8, %v16_v8 }
   0x6   :  { %63 = vtanh.f32 %v25_v7 }
   0x7   :  { %65 = vtanh.f32 %v26_v9  ;;  %v35_v12 = vadd.f32 %v34_v11, %v33_v10 }
   0x9   :  { %45 = vst [vmem:[%s108_s2] sm:$0xff] %v35_v12 }
   0xe   :  { %v60_v13 = vpop.eup %59 }
   0xf   :  { %v62_v14 = vpop.eup %61  ;;  %v21_v15 = vmul.f32 0.5, %v60_v13 }
  0x10   :  { %v64_v16 = vpop.eup %63  ;;  %v22_v17 = vmul.f32 0.5, %v62_v14 }
  0x11   :  { %v66_v18 = vpop.eup %65  ;;  %v23_v19 = vadd.f32 0.5, %v21_v15  ;;  %v29_v20 = vmul.f32 0.5, %v64_v16 }
  0x12   :  { %v24_v21 = vadd.f32 0.5, %v22_v17  ;;  %v30_v22 = vmul.f32 0.5, %v66_v18 }
  0x13   :  { %v31_v23 = vadd.f32 0.5, %v29_v20 }
  0x14   :  { %v32_v24 = vadd.f32 0.5, %v30_v22  ;;  %v41_v25 = vadd.f32 %v24_v21, %v23_v19 }
  0x15   :  { %v37_v26 = vmul.f32 %v31_v23, %v23_v19 }
  0x16   :  { %v38_v27 = vmul.f32 %v32_v24, %v24_v21  ;;  %57 = vst [vmem:[%s108_s2 + $0x10] sm:$0xff] %v41_v25  ;;  %v43_v28 = vadd.f32 %v32_v24, %v31_v23 }
  0x18   :  { %v39_v29 = vadd.f32 %v38_v27, %v37_v26  ;;  %58 = vst [vmem:[%s108_s2 + $0x18] sm:$0xff] %v43_v28 }
  0x1a   :  { %56 = vst [vmem:[%s108_s2 + $0x8] sm:$0xff] %v39_v29 }

</bundles_post_ra>
